<compile_context>
chip_gen: v5e
topology: v5e:2x2
jax: 0.10.0
libtpu: 0.0.40
codegen_flags: <defaults>
</compile_context>

<pallas_src>
import functools

import jax
import jax.numpy as jnp
from jax.experimental import pallas as pl
from jax.experimental.pallas import tpu as pltpu


def _round_up(a, b):
    return (a + b - 1) // b * b


def _mlp_kernel(x_ref, wg_ref, wu_ref, wd_ref, o_ref, acc_ref):
    k = pl.program_id(1)

    @pl.when(k == 0)
    def _init():
        acc_ref[...] = jnp.zeros_like(acc_ref)

    x = x_ref[...]                                                     # (tm, H)
    # gate projection + SiLU (sigmoid runs on the EUP slot, effectively free)
    g = jnp.dot(x, wg_ref[...], preferred_element_type=jnp.float32)   # (tm, ti)
    g = g * jax.nn.sigmoid(g)
    # up projection, multiplied into the same value to keep live f32 temps low
    u = jnp.dot(x, wu_ref[...], preferred_element_type=jnp.float32)   # (tm, ti)
    g = g * u
    # partial down projection accumulated in f32 VMEM scratch
    acc_ref[...] += jnp.dot(
        g.astype(wd_ref.dtype), wd_ref[...], preferred_element_type=jnp.float32
    )

    @pl.when(k == pl.num_programs(1) - 1)
    def _finalize():
        o_ref[...] = acc_ref[...].astype(o_ref.dtype)


@functools.partial(jax.jit, static_argnames=("tm", "ti"))
def mlp_pallas(x, w_gate, w_up, w_down, *, tm=256, ti=1024):
    """x: (B, S, H).  w_gate/w_up: (H, I).  w_down: (I, H).  bf16 or f32."""
    B, S, H = x.shape
    I = w_gate.shape[1]
    N = B * S

    # Alignment / padding.  Zero padding is exact for SwiGLU:
    # padded rows/cols of the weights are zero, silu(0) * 0 == 0, and zero
    # rows of w_down contribute nothing to the accumulator.
    Hp = _round_up(H, 128)                      # lane-dense hidden dim
    ti = _round_up(min(ti, _round_up(I, 128)), 128)
    Ip = _round_up(I, ti)                       # padded intermediate dim
    tm = _round_up(min(tm, _round_up(N, 8)), 8)  # token tile (>=8 sublanes)
    Np = _round_up(N, tm)                       # padded token count (ragged ok)

    x2 = x.reshape(N, H)
    if (Np, Hp) != (N, H):
        x2 = jnp.pad(x2, ((0, Np - N), (0, Hp - H)))
    if (Hp, Ip) != (H, I):
        w_gate = jnp.pad(w_gate, ((0, Hp - H), (0, Ip - I)))
        w_up = jnp.pad(w_up, ((0, Hp - H), (0, Ip - I)))
        w_down = jnp.pad(w_down, ((0, Ip - I), (0, Hp - H)))

    n_tok_tiles = Np // tm
    n_red_tiles = Ip // ti

    xbytes = jnp.dtype(x.dtype).itemsize
    wbytes = jnp.dtype(w_gate.dtype).itemsize

    # Rough VMEM budget: double-buffered x / out / weight tiles + f32 acc.
    vmem_need = (
        2 * tm * Hp * xbytes            # x token tile
        + 2 * tm * Hp * xbytes          # output tile
        + 2 * 2 * Hp * ti * wbytes      # gate + up weight tiles
        + 2 * ti * Hp * wbytes          # down weight tile
        + tm * Hp * 4                   # accumulator scratch
    )
    vmem_limit = min(max(int(vmem_need * 1.25) + (2 << 20), 32 << 20), 96 << 20)

    cost = pl.CostEstimate(
        flops=2 * Np * Hp * Ip * 3,
        transcendentals=Np * Ip,
        bytes_accessed=(
            Np * Hp * xbytes * 2                                  # x in + out
            + n_tok_tiles * (2 * Hp * Ip + Ip * Hp) * wbytes      # weights re-streamed
        ),
    )

    out = pl.pallas_call(
        _mlp_kernel,
        out_shape=jax.ShapeDtypeStruct((Np, Hp), x.dtype),
        grid_spec=pltpu.PrefetchScalarGridSpec(
            num_scalar_prefetch=0,
            grid=(n_tok_tiles, n_red_tiles),          # reduction axis last
            in_specs=[
                pl.BlockSpec((tm, Hp), lambda i, k: (i, 0)),   # x token tile
                pl.BlockSpec((Hp, ti), lambda i, k: (0, k)),   # gate weight tile
                pl.BlockSpec((Hp, ti), lambda i, k: (0, k)),   # up weight tile
                pl.BlockSpec((ti, Hp), lambda i, k: (k, 0)),   # down weight tile
            ],
            out_specs=pl.BlockSpec((tm, Hp), lambda i, k: (i, 0)),
            scratch_shapes=[pltpu.VMEM((tm, Hp), jnp.float32)],
        ),
        compiler_params=pltpu.CompilerParams(
            dimension_semantics=("parallel", "arbitrary"),
            vmem_limit_bytes=vmem_limit,
        ),
        cost_estimate=cost,
    )(x2, w_gate, w_up, w_down)

    return out[:N, :H].reshape(B, S, H)


def mlp_reference(x, w_gate, w_up, w_down):
    g = jnp.einsum("bsh,hi->bsi", x, w_gate)
    u = jnp.einsum("bsh,hi->bsi", x, w_up)
    h = jax.nn.silu(g) * u
    return jnp.einsum("bsi,ih->bsh", h, w_down)


if __name__ == "__main__":
    # Small shapes consistent with the module's forward: (B, S, H) -> (B, S, H)
    B, S, H, I = 2, 8, 32, 64

    key = jax.random.PRNGKey(0)
    kx, kg, ku, kd = jax.random.split(key, 4)
    x = jax.random.normal(kx, (B, S, H), dtype=jnp.float32)
    # Weights stored as (in, out) — transpose of torch Linear.weight.
    w_gate = jax.random.normal(kg, (H, I), dtype=jnp.float32) * (1.0 / H ** 0.5)
    w_up = jax.random.normal(ku, (H, I), dtype=jnp.float32) * (1.0 / H ** 0.5)
    w_down = jax.random.normal(kd, (I, H), dtype=jnp.float32) * (1.0 / I ** 0.5)

    out = mlp_pallas(x, w_gate, w_up, w_down)
    jax.block_until_ready(out)

    ref = mlp_reference(x, w_gate, w_up, w_down)
    assert out.shape == (B, S, H)
    assert jnp.allclose(out, ref, atol=1e-4, rtol=1e-4), "mismatch vs reference"
    print("KERNEL_OK")
</pallas_src>

<mosaic_0001>
module attributes {stable_mosaic.version = 11 : i64} {
  func.func @_mlp_kernel(%arg0: i32, %arg1: i32, %arg2: memref<16x128xf32, #tpu.memory_space<vmem>>, %arg3: memref<128x128xf32, #tpu.memory_space<vmem>>, %arg4: memref<128x128xf32, #tpu.memory_space<vmem>>, %arg5: memref<128x128xf32, #tpu.memory_space<vmem>>, %arg6: memref<16x128xf32, #tpu.memory_space<vmem>>, %arg7: memref<16x128xf32, #tpu.memory_space<vmem>>) attributes {dimension_semantics = [#tpu.dimension_semantics<parallel>, #tpu.dimension_semantics<arbitrary>], iteration_bounds = array<i64: 1, 1>, scalar_prefetch = 0 : i64, scratch_operands = 1 : i64, tpu.core_type = #tpu.core_type<tc>, window_params = [{transform_indices = @transform_0, window_bounds = array<i64: 16, 128>}, {transform_indices = @transform_1, window_bounds = array<i64: 128, 128>}, {transform_indices = @transform_2, window_bounds = array<i64: 128, 128>}, {transform_indices = @transform_3, window_bounds = array<i64: 128, 128>}, {transform_indices = @transform_4, window_bounds = array<i64: 16, 128>}]} {
    %c0_i32 = arith.constant 0 : i32
    %0 = arith.cmpi eq, %arg1, %c0_i32 : i32
    %1 = arith.extui %0 : i1 to i32
    %c0_i32_0 = arith.constant 0 : i32
    %2 = arith.cmpi ne, %1, %c0_i32_0 : i32
    scf.if %2 {
      %cst_17 = arith.constant 0.000000e+00 : f32
      %23 = vector.broadcast %cst_17 : f32 to vector<16x128xf32>
      %c0_18 = arith.constant 0 : index
      %c0_19 = arith.constant 0 : index
      %24 = vector.load %arg7[%c0_18, %c0_19] : memref<16x128xf32, #tpu.memory_space<vmem>>, vector<16x128xf32>
      tpu.vector_store %arg7[%c0_18, %c0_19], %23 {strides = array<i32>} : memref<16x128xf32, #tpu.memory_space<vmem>>, vector<16x128xf32>,
    } else {
    }
    %c0 = arith.constant 0 : index
    %c0_1 = arith.constant 0 : index
    %3 = vector.load %arg2[%c0, %c0_1] : memref<16x128xf32, #tpu.memory_space<vmem>>, vector<16x128xf32>
    %c0_2 = arith.constant 0 : index
    %c0_3 = arith.constant 0 : index
    %4 = vector.load %arg3[%c0_2, %c0_3] : memref<128x128xf32, #tpu.memory_space<vmem>>, vector<128x128xf32>
    %cst = arith.constant dense<0.000000e+00> : vector<16x128xf32>
    %5 = tpu.matmul %3, %4, %cst {dimension_numbers = #tpu.dot_dimension_numbers<[1], [0], [0], [1], [0, 0, 1, 1], [], []>} : vector<16x128xf32>, vector<128x128xf32>, vector<16x128xf32> -> vector<16x128xf32>
    %6 = arith.negf %5 : vector<16x128xf32>
    %7 = math.exp %6 : vector<16x128xf32>
    %cst_4 = arith.constant 1.000000e+00 : f32
    %8 = vector.broadcast %cst_4 : f32 to vector<16x128xf32>
    %9 = arith.addf %8, %7 : vector<16x128xf32>
    %10 = arith.divf %8, %9 : vector<16x128xf32>
    %11 = arith.mulf %5, %10 : vector<16x128xf32>
    %c0_5 = arith.constant 0 : index
    %c0_6 = arith.constant 0 : index
    %12 = vector.load %arg4[%c0_5, %c0_6] : memref<128x128xf32, #tpu.memory_space<vmem>>, vector<128x128xf32>
    %cst_7 = arith.constant dense<0.000000e+00> : vector<16x128xf32>
    %13 = tpu.matmul %3, %12, %cst_7 {dimension_numbers = #tpu.dot_dimension_numbers<[1], [0], [0], [1], [0, 0, 1, 1], [], []>} : vector<16x128xf32>, vector<128x128xf32>, vector<16x128xf32> -> vector<16x128xf32>
    %14 = arith.mulf %11, %13 : vector<16x128xf32>
    %c0_8 = arith.constant 0 : index
    %c0_9 = arith.constant 0 : index
    %15 = vector.load %arg7[%c0_8, %c0_9] : memref<16x128xf32, #tpu.memory_space<vmem>>, vector<16x128xf32>
    %c0_10 = arith.constant 0 : index
    %c0_11 = arith.constant 0 : index
    %16 = vector.load %arg5[%c0_10, %c0_11] : memref<128x128xf32, #tpu.memory_space<vmem>>, vector<128x128xf32>
    %cst_12 = arith.constant dense<0.000000e+00> : vector<16x128xf32>
    %17 = tpu.matmul %14, %16, %cst_12 {dimension_numbers = #tpu.dot_dimension_numbers<[1], [0], [0], [1], [0, 0, 1, 1], [], []>} : vector<16x128xf32>, vector<128x128xf32>, vector<16x128xf32> -> vector<16x128xf32>
    %18 = arith.addf %15, %17 : vector<16x128xf32>
    %c0_13 = arith.constant 0 : index
    %c0_14 = arith.constant 0 : index
    %19 = vector.load %arg7[%c0_13, %c0_14] : memref<16x128xf32, #tpu.memory_space<vmem>>, vector<16x128xf32>
    tpu.vector_store %arg7[%c0_13, %c0_14], %18 {strides = array<i32>} : memref<16x128xf32, #tpu.memory_space<vmem>>, vector<16x128xf32>,
    %c0_i32_15 = arith.constant 0 : i32
    %20 = arith.cmpi eq, %arg1, %c0_i32_15 : i32
    %21 = arith.extui %20 : i1 to i32
    %c0_i32_16 = arith.constant 0 : i32
    %22 = arith.cmpi ne, %21, %c0_i32_16 : i32
    scf.if %22 {
      %c0_17 = arith.constant 0 : index
      %c0_18 = arith.constant 0 : index
      %23 = vector.load %arg7[%c0_17, %c0_18] : memref<16x128xf32, #tpu.memory_space<vmem>>, vector<16x128xf32>
      %c0_19 = arith.constant 0 : index
      %c0_20 = arith.constant 0 : index
      %24 = vector.load %arg6[%c0_19, %c0_20] : memref<16x128xf32, #tpu.memory_space<vmem>>, vector<16x128xf32>
      tpu.vector_store %arg6[%c0_19, %c0_20], %23 {strides = array<i32>} : memref<16x128xf32, #tpu.memory_space<vmem>>, vector<16x128xf32>,
    } else {
    }
    return
  }
  func.func @transform_0(%arg0: i32, %arg1: i32) -> (i32, i32) {
    %c0_i32 = arith.constant 0 : i32
    %c0_i32_0 = arith.constant 0 : i32
    return %arg0, %c0_i32 : i32, i32
  }
  func.func @transform_1(%arg0: i32, %arg1: i32) -> (i32, i32) {
    %c0_i32 = arith.constant 0 : i32
    %c0_i32_0 = arith.constant 0 : i32
    return %c0_i32, %arg1 : i32, i32
  }
  func.func @transform_2(%arg0: i32, %arg1: i32) -> (i32, i32) {
    %c0_i32 = arith.constant 0 : i32
    %c0_i32_0 = arith.constant 0 : i32
    return %c0_i32, %arg1 : i32, i32
  }
  func.func @transform_3(%arg0: i32, %arg1: i32) -> (i32, i32) {
    %c0_i32 = arith.constant 0 : i32
    %c0_i32_0 = arith.constant 0 : i32
    return %arg1, %c0_i32 : i32, i32
  }
  func.func @transform_4(%arg0: i32, %arg1: i32) -> (i32, i32) {
    %c0_i32 = arith.constant 0 : i32
    %c0_i32_0 = arith.constant 0 : i32
    return %arg0, %c0_i32 : i32, i32
  }
}

</mosaic_0001>

<bundles_post_ra>
// kernel: mlp_pallas.1
= control target key start
LH: loop header
LB: loop body
LE: loop exit
PB: predicated region body
PF: predicated region fallthrough
CT: control target
= control target key end

     0   :  { %s408_s1 = inlined_call_operand.vmem [shape: f32[128,128], index: 1, kind: input, shape index: {}]   ;;  %s409_s2 = inlined_call_operand.vmem [shape: f32[128,128], index: 2, kind: input, shape index: {}]   ;;  %s410_s0 = inlined_call_operand.vmem [shape: f32[16,128], index: 0, kind: input, shape index: {}]   ;;  %s411_s3 = inlined_call_operand.vmem [shape: f32[128,128], index: 3, kind: input, shape index: {}]   ;;  %s412_s4 = inlined_call_operand.vmem [shape: f32[16,128], index: 4, kind: output, shape index: {}]  }
   0x1   :  { %v40_v0 = vld [vmem:[%s408_s1 + $0x78] sm:$0xff]  ;;  %v39_v1 = vld [vmem:[%s408_s1 + $0x70] sm:$0xff]  ;;  %v38_v2 = vld [vmem:[%s408_s1 + $0x68] sm:$0xff] }
   0x2   :  { %41 = vmatpush.msra.mxu0 %v40_v0  ;;  %203 = vmatpush.msra.mxu3 %v40_v0  ;;  %v37_v3 = vld [vmem:[%s408_s1 + $0x60] sm:$0xff]  ;;  %v119_v4 = vld [vmem:[%s409_s2 + $0x78] sm:$0xff]  ;;  %v118_v5 = vld [vmem:[%s409_s2 + $0x70] sm:$0xff] }
   0x3   :  { %v36_v6 = vld [vmem:[%s408_s1 + $0x58] sm:$0xff]  ;;  %120 = vmatpush.msra.mxu1 %v119_v4  ;;  %v117_v7 = vld [vmem:[%s409_s2 + $0x68] sm:$0xff]  ;;  %v35_v8 = vld [vmem:[%s408_s1 + $0x50] sm:$0xff] }
   0x4   :  { %42 = vmatpush.msra.mxu0 %v39_v1  ;;  %204 = vmatpush.msra.mxu3 %v39_v1  ;;  %v116_v9 = vld [vmem:[%s409_s2 + $0x60] sm:$0xff]  ;;  %v34_v10 = vld [vmem:[%s408_s1 + $0x48] sm:$0xff]  ;;  %v115_v11 = vld [vmem:[%s409_s2 + $0x58] sm:$0xff] }
   0x5   :  { %121 = vmatpush.msra.mxu1 %v118_v5  ;;  %v33_v12 = vld [vmem:[%s408_s1 + $0x40] sm:$0xff]  ;;  %v114_v13 = vld [vmem:[%s409_s2 + $0x50] sm:$0xff]  ;;  %v32_v14 = vld [vmem:[%s408_s1 + $0x38] sm:$0xff] }
   0x6   :  { %43 = vmatpush.msra.mxu0 %v38_v2  ;;  %205 = vmatpush.msra.mxu3 %v38_v2  ;;  %v113_v15 = vld [vmem:[%s409_s2 + $0x48] sm:$0xff]  ;;  %v31_v16 = vld [vmem:[%s408_s1 + $0x30] sm:$0xff]  ;;  %v112_v17 = vld [vmem:[%s409_s2 + $0x40] sm:$0xff] }
   0x7   :  { %122 = vmatpush.msra.mxu1 %v117_v7  ;;  %v30_v18 = vld [vmem:[%s408_s1 + $0x28] sm:$0xff]  ;;  %v111_v19 = vld [vmem:[%s409_s2 + $0x38] sm:$0xff]  ;;  %v29_v20 = vld [vmem:[%s408_s1 + $0x20] sm:$0xff] }
   0x8   :  { %44 = vmatpush.msra.mxu0 %v37_v3  ;;  %206 = vmatpush.msra.mxu3 %v37_v3  ;;  %v110_v21 = vld [vmem:[%s409_s2 + $0x30] sm:$0xff]  ;;  %v28_v22 = vld [vmem:[%s408_s1 + $0x18] sm:$0xff]  ;;  %v109_v23 = vld [vmem:[%s409_s2 + $0x28] sm:$0xff] }
   0x9   :  { %123 = vmatpush.msra.mxu1 %v116_v9  ;;  %v27_v24 = vld [vmem:[%s408_s1 + $0x10] sm:$0xff]  ;;  %v108_v25 = vld [vmem:[%s409_s2 + $0x20] sm:$0xff]  ;;  %v26_v26 = vld [vmem:[%s408_s1 + $0x8] sm:$0xff] }
   0xa   :  { %45 = vmatpush.msra.mxu0 %v36_v6  ;;  %207 = vmatpush.msra.mxu3 %v36_v6  ;;  %v107_v27 = vld [vmem:[%s409_s2 + $0x18] sm:$0xff]  ;;  %v25_v28 = vld [vmem:[%s408_s1] sm:$0xff]  ;;  %v24_v30 = vld [vmem:[%s410_s0 + $0x8] sm:$0xff] }
   0xb   :  { %124 = vmatpush.msra.mxu1 %v115_v11  ;;  %v23_v29 = vld [vmem:[%s410_s0] sm:$0xff]  ;;  %v106_v31 = vld [vmem:[%s409_s2 + $0x10] sm:$0xff]  ;;  %v105_v32 = vld [vmem:[%s409_s2 + $0x8] sm:$0xff] }
   0xc   :  { %46 = vmatpush.msra.mxu0 %v35_v8  ;;  %208 = vmatpush.msra.mxu3 %v35_v8  ;;  %v104_v33 = vld [vmem:[%s409_s2] sm:$0xff]  ;;  %v162_v34 = vld [vmem:[%s411_s3 + $0x78] sm:$0xff]  ;;  %v161_v35 = vld [vmem:[%s411_s3 + $0x70] sm:$0xff] }
   0xd   :  { %125 = vmatpush.msra.mxu1 %v114_v13  ;;  %163 = vmatpush.msra.mxu2 %v162_v34  ;;  %v160_v36 = vld [vmem:[%s411_s3 + $0x68] sm:$0xff]  ;;  %v159_v37 = vld [vmem:[%s411_s3 + $0x60] sm:$0xff]  ;;  %v158_v38 = vld [vmem:[%s411_s3 + $0x58] sm:$0xff] }
   0xe   :  { %47 = vmatpush.msra.mxu0 %v34_v10  ;;  %209 = vmatpush.msra.mxu3 %v34_v10  ;;  %v157_v39 = vld [vmem:[%s411_s3 + $0x50] sm:$0xff]  ;;  %v156_v40 = vld [vmem:[%s411_s3 + $0x48] sm:$0xff]  ;;  %v155_v41 = vld [vmem:[%s411_s3 + $0x40] sm:$0xff] }
   0xf   :  { %126 = vmatpush.msra.mxu1 %v113_v15  ;;  %164 = vmatpush.msra.mxu2 %v161_v35  ;;  %v154_v42 = vld [vmem:[%s411_s3 + $0x38] sm:$0xff]  ;;  %v153_v43 = vld [vmem:[%s411_s3 + $0x30] sm:$0xff]  ;;  %v152_v44 = vld [vmem:[%s411_s3 + $0x28] sm:$0xff] }
  0x10   :  { %48 = vmatpush.msra.mxu0 %v33_v12  ;;  %210 = vmatpush.msra.mxu3 %v33_v12  ;;  %v151_v45 = vld [vmem:[%s411_s3 + $0x20] sm:$0xff]  ;;  %v150_v46 = vld [vmem:[%s411_s3 + $0x18] sm:$0xff]  ;;  %v149_v47 = vld [vmem:[%s411_s3 + $0x10] sm:$0xff] }
  0x11   :  { %127 = vmatpush.msra.mxu1 %v112_v17  ;;  %165 = vmatpush.msra.mxu2 %v160_v36  ;;  %v148_v48 = vld [vmem:[%s411_s3 + $0x8] sm:$0xff]  ;;  %v147_v49 = vld [vmem:[%s411_s3] sm:$0xff] }
  0x12   :  { %49 = vmatpush.msra.mxu0 %v32_v14  ;;  %211 = vmatpush.msra.mxu3 %v32_v14 }
  0x13   :  { %128 = vmatpush.msra.mxu1 %v111_v19  ;;  %166 = vmatpush.msra.mxu2 %v159_v37 }
  0x14   :  { %50 = vmatpush.msra.mxu0 %v31_v16  ;;  %212 = vmatpush.msra.mxu3 %v31_v16 }
  0x15   :  { %129 = vmatpush.msra.mxu1 %v110_v21  ;;  %167 = vmatpush.msra.mxu2 %v158_v38 }
  0x16   :  { %51 = vmatpush.msra.mxu0 %v30_v18  ;;  %213 = vmatpush.msra.mxu3 %v30_v18 }
  0x17   :  { %130 = vmatpush.msra.mxu1 %v109_v23  ;;  %168 = vmatpush.msra.mxu2 %v157_v39 }
  0x18   :  { %52 = vmatpush.msra.mxu0 %v29_v20  ;;  %214 = vmatpush.msra.mxu3 %v29_v20 }
  0x19   :  { %131 = vmatpush.msra.mxu1 %v108_v25  ;;  %169 = vmatpush.msra.mxu2 %v156_v40 }
  0x1a   :  { %53 = vmatpush.msra.mxu0 %v28_v22  ;;  %215 = vmatpush.msra.mxu3 %v28_v22 }
  0x1b   :  { %132 = vmatpush.msra.mxu1 %v107_v27  ;;  %170 = vmatpush.msra.mxu2 %v155_v41 }
  0x1c   :  { %54 = vmatpush.msra.mxu0 %v27_v24  ;;  %216 = vmatpush.msra.mxu3 %v27_v24 }
  0x1d   :  { %133 = vmatpush.msra.mxu1 %v106_v31  ;;  %171 = vmatpush.msra.mxu2 %v154_v42 }
  0x1e   :  { %55 = vmatpush.msra.mxu0 %v26_v26  ;;  %217 = vmatpush.msra.mxu3 %v26_v26 }
  0x1f   :  { %134 = vmatpush.msra.mxu1 %v105_v32  ;;  %172 = vmatpush.msra.mxu2 %v153_v43 }
  0x20   :  { %56 = vmatpush.msra.mxu0 %v25_v28  ;;  %218 = vmatpush.msra.mxu3 %v25_v28 }
  0x21   :  { %57 = vmatmul.f32.vlgmr.msra.gmra.mxu0 %v23_v29  ;;  %60 = vmatmul.f32.vlgmr.msra.gmra.mxu3 %v24_v30 }
  0x22   :  { %135 = vmatpush.msra.mxu1 %v104_v33  ;;  %173 = vmatpush.msra.mxu2 %v152_v44 }
  0x23   :  { %136 = vmatmul.f32.vlgmr.msra.gmra.mxu1 %v23_v29 }
  0x24   :  { %174 = vmatpush.msra.mxu2 %v151_v45 }
  0x26   :  { %175 = vmatpush.msra.mxu2 %v150_v46 }
  0x28   :  { %176 = vmatpush.msra.mxu2 %v149_v47 }
  0x2a   :  { %177 = vmatpush.msra.mxu2 %v148_v48 }
  0x2b   :  { %139 = vmatmul.f32.gmra.mxu1 %v24_v30 }
  0x2c   :  { %178 = vmatpush.msra.mxu2 %v147_v49 }
  0x9e   :  { %v58_v50 = vpop.f32.mrf.mxu0 }
  0x9f   :  { %v201_v51 = vmul.f32 -1.442695, %v58_v50 }
  0xa0   :  { %v137_v4 = vpop.f32.mrf.mxu1 }
  0xa1   :  { %219 = vpow2.f32 %v201_v51 }
  0xa4   :  { %v61_v52 = vpop.f32.mrf.mxu3 }
  0xa5   :  { %v202_v53 = vmul.f32 -1.442695, %v61_v52 }
  0xa7   :  { %v220_v54 = vpop.eup %219  ;;  %221 = vpow2.f32 %v202_v53 }
  0xa8   :  { %v70_v55 = vadd.f32 1.0, %v220_v54  ;;  %v140_v18 = vpop.f32.mrf.mxu1 }
  0xaa   :  { %223 = vrcp.f32 %v70_v55  ;;  %v83_v61 = vand.u32 2147483648, %v70_v55  ;;  %v81_v63 = vand.u32 2147483647, %v70_v55  ;;  %vm77_vm1 = vweird.f32 %v70_v55 }
  0xac   :  { %v84_v3 = vor.u32 1.1754944e-38, %v83_v61  ;;  %vm82_vm3 = vcmp.eq.f32.partialorder %v81_v63, 8.507059e+37 }
  0xad   :  { %v222_v56 = vpop.eup %221 }
  0xae   :  { %v71_v57 = vadd.f32 1.0, %v222_v56 }
  0xb0   :  { %v224_v58 = vpop.eup %223  ;;  %225 = vrcp.f32 %v71_v57  ;;  %v98_v8 = vand.u32 2147483648, %v71_v57  ;;  %v96_v11 = vand.u32 2147483647, %v71_v57  ;;  %vm92_vm5 = vweird.f32 %v71_v57 }
  0xb1   :  { %v73_v59 = vmul.f32 %v224_v58, %v70_v55  ;;  %vm78_vm0 = vweird.f32 %v224_v58 }
  0xb2   :  { %vm79_vm2 = vmor %vm77_vm1, %vm78_vm0  ;;  %v99_v14 = vor.u32 1.1754944e-38, %v98_v8  ;;  %vm97_vm7 = vcmp.eq.f32.partialorder %v96_v11, 8.507059e+37 }
  0xb3   :  { %v74_v60 = vsub.f32 1.0, %v73_v59 }
  0xb5   :  { %v75_v62 = vmul.f32 %v224_v58, %v74_v60 }
  0xb6   :  { %v226_v0 = vpop.eup %225 }
  0xb7   :  { %v76_v1 = vadd.f32 %v224_v58, %v75_v62  ;;  %v88_v2 = vmul.f32 %v226_v0, %v71_v57  ;;  %vm93_vm4 = vweird.f32 %v226_v0 }
  0xb8   :  { %vm94_vm6 = vmor %vm92_vm5, %vm93_vm4 }
  0xb9   :  { %v80_v5 = vsel %vm79_vm2, %v224_v58, %v76_v1  ;;  %v89_v6 = vsub.f32 1.0, %v88_v2 }
  0xba   :  { %v85_v7 = vsel %vm82_vm3, %v84_v3, %v80_v5 }
  0xbb   :  { %v102_v9 = vmul.f32 %v85_v7, %v58_v50  ;;  %v90_v10 = vmul.f32 %v226_v0, %v89_v6 }
  0xbd   :  { %v91_v12 = vadd.f32 %v226_v0, %v90_v10  ;;  %v143_v13 = vmul.f32 %v137_v4, %v102_v9 }
  0xbf   :  { %v95_v15 = vsel %vm94_vm6, %v226_v0, %v91_v12  ;;  %179 = vmatmul.f32.vlgmr.msra.gmra.mxu2 %v143_v13 }
  0xc0   :  { %v100_v16 = vsel %vm97_vm7, %v99_v14, %v95_v15 }
  0xc1   :  { %v103_v17 = vmul.f32 %v100_v16, %v61_v52 }
  0xc3   :  { %v144_v19 = vmul.f32 %v140_v18, %v103_v17 }
  0xc7   :  { %182 = vmatmul.f32.gmra.mxu2 %v144_v19 }
 0x142   :  { %v180_v20 = vpop.f32.mrf.mxu2 }
 0x143   :  { %195 = vst [vmem:[%s412_s4] sm:$0xff] %v180_v20 }
 0x14a   :  { %v183_v21 = vpop.f32.mrf.mxu2 }
 0x14b   :  { %196 = vst [vmem:[%s412_s4 + $0x8] sm:$0xff] %v183_v21 }

</bundles_post_ra>
